<compile_context>
chip_gen: v7x
topology: tpu7x:2x2x1
jax: 0.10.0
libtpu: 0.0.40
codegen_flags: <defaults>
</compile_context>

<pallas_src>
import jax
import jax.numpy as jnp
from jax.experimental import pallas as pl
from jax.experimental.pallas import tpu as pltpu


_SUBLANE = 8       # f32 sublane tile height
_MAX_UNROLL = 8    # max recurrence steps unrolled per grid iteration


def _rnn_seq_kernel(x_ref, wih_ref, whh_ref, b_ref, out_ref, h_ref):
    """One (batch-block, time-chunk) tile of the RNN sequence.

    x_ref   : (TC, BB, D) f32   time-major input chunk for this batch block
    wih_ref : (D, H)      bf16  input->hidden weights (resident)
    whh_ref : (H, H)      bf16  hidden->hidden weights (resident)
    b_ref   : (1, H)      f32   bias
    out_ref : (BB, TC*H)  f32   lane-dense output slab for this tile
    h_ref   : (BB, H)     f32   hidden-state scratch, persists across chunks
    """
    c = pl.program_id(1)  # time-chunk axis (innermost, "arbitrary")

    @pl.when(c == 0)
    def _():
        # hidden_state = torch.zeros((batch_size, state_size));
        # re-initialized at the start of every batch block's chunk sequence.
        h_ref[...] = jnp.zeros_like(h_ref)

    tc, bb, d = x_ref.shape
    h_dim = whh_ref.shape[0]

    # (1) Hoisted, time-independent input projection: ONE MXU matmul over the
    #     whole chunk (bf16 operands, f32 accumulation), off the serial chain.
    #     BB is a sublane multiple, so (TC, BB, D) -> (TC*BB, D) is a
    #     tile-aligned relayout; the bf16 cast happens on the flat 2-D value.
    x2d = x_ref[...].reshape(tc * bb, d).astype(jnp.bfloat16)
    p = jnp.dot(x2d, wih_ref[...],
                preferred_element_type=jnp.float32) + b_ref[...]

    w_hh = whh_ref[...]
    h = h_ref[...]

    # (2) Serial recurrence.  tc <= _MAX_UNROLL and static, so this is a small
    #     bounded unroll; the carried h stays in vregs within the chunk.
    for t in range(tc):
        rec = jnp.dot(h.astype(jnp.bfloat16), w_hh,
                      preferred_element_type=jnp.float32)
        # Sublane-aligned slice of the hoisted projection (bb % 8 == 0),
        # f32 add + f32 tanh (v5e-safe EUP path).
        h = jnp.tanh(p[t * bb:(t + 1) * bb, :] + rec)
        # (3) Per-step store into the lane-dense output slab (no list+concat,
        #     no TC live values held to end-of-chunk).
        out_ref[:, t * h_dim:(t + 1) * h_dim] = h

    h_ref[...] = h


def rnn_sequence_forward(x, w_ih, w_hh, b, *, time_chunk=None, batch_block=None):
    """x: (B, T, D) float32.  Returns outputs: (B, T, H) float32."""
    B, T, D = x.shape
    H = w_hh.shape[0]

    # Pad batch to a sublane multiple so per-step slices / stores and the
    # recurrence matmuls use full 8-row tiles.
    B_pad = -(-B // _SUBLANE) * _SUBLANE

    if time_chunk is None:
        time_chunk = min(T, _MAX_UNROLL)       # bounded unroll
    assert T % time_chunk == 0
    num_chunks = T // time_chunk
    # Keep the output slab lane-dense (multiple of 128 lanes) unless it spans
    # the whole array anyway.
    assert (time_chunk * H) % 128 == 0 or num_chunks == 1

    if batch_block is None:
        batch_block = min(B_pad, 128)
    assert B_pad % batch_block == 0
    num_bblocks = B_pad // batch_block

    # Time-major padded input.  The pad already forces a copy of x, so the
    # transpose is fused into it rather than being a separate HBM pass.
    x_tb = jnp.transpose(
        jnp.pad(x.astype(jnp.float32), ((0, B_pad - B), (0, 0), (0, 0))),
        (1, 0, 2))                                           # (T, B_pad, D)

    wih_bf = w_ih.astype(jnp.bfloat16)
    whh_bf = w_hh.astype(jnp.bfloat16)
    b2d = b.reshape(1, H).astype(jnp.float32)

    # Explicit VMEM budget: double-buffered x / out blocks, resident weights,
    # in-kernel projection temp and the hidden-state scratch, with headroom.
    # Raises v5e's 16 MiB scoped default; capped at v7x's 64 MiB physical.
    est = (2 * time_chunk * batch_block * D * 4        # x blocks (f32, 2 bufs)
           + 2 * batch_block * time_chunk * H * 4      # out blocks (f32, 2 bufs)
           + 2 * (D * H + H * H + H) * 2               # resident weights (bf16)
           + time_chunk * batch_block * H * 4          # in-kernel p temp
           + batch_block * H * 4)                      # h scratch
    vmem_limit = int(min(max(2 * est, 32 * 2 ** 20), 64 * 2 ** 20))

    out_flat = pl.pallas_call(
        _rnn_seq_kernel,
        out_shape=jax.ShapeDtypeStruct((B_pad, T * H), jnp.float32),
        grid_spec=pltpu.PrefetchScalarGridSpec(
            num_scalar_prefetch=0,
            # batch blocks (parallel: shards across v7x's 2 TCs) x time chunks
            # (arbitrary: hidden state carried through the scratch in order).
            grid=(num_bblocks, num_chunks),
            in_specs=[
                pl.BlockSpec((time_chunk, batch_block, D),
                             lambda bb, c: (c, bb, 0)),
                # resident weights / bias: constant index_map -> no re-DMA
                pl.BlockSpec((D, H), lambda bb, c: (0, 0)),
                pl.BlockSpec((H, H), lambda bb, c: (0, 0)),
                pl.BlockSpec((1, H), lambda bb, c: (0, 0)),
            ],
            out_specs=pl.BlockSpec((batch_block, time_chunk * H),
                                   lambda bb, c: (bb, c)),
            scratch_shapes=[pltpu.VMEM((batch_block, H), jnp.float32)],
        ),
        compiler_params=pltpu.CompilerParams(
            dimension_semantics=("parallel", "arbitrary"),
            vmem_limit_bytes=vmem_limit,
        ),
    )(x_tb, wih_bf, whh_bf, b2d)

    # (B_pad, T*H) -> (B_pad, T, H) is a contiguous (free) reshape, matching
    # torch.stack(outputs, dim=1); then drop the batch padding.
    return out_flat.reshape(B_pad, T, H)[:B]


def rnn_sequence_reference(x, w_ih, w_hh, b):
    """Pure-JAX f32 reference mirroring the torch loop."""
    B, T, D = x.shape
    H = w_hh.shape[0]

    def step(h, x_t):
        h_new = jnp.tanh(x_t @ w_ih + h @ w_hh + b)
        return h_new, h_new

    h0 = jnp.zeros((B, H), jnp.float32)
    _, outs = jax.lax.scan(step, h0, jnp.transpose(x, (1, 0, 2)))
    return jnp.transpose(outs, (1, 0, 2))


if __name__ == "__main__":
    # Small shapes consistent with the module: batch=2, seq=8, in=4, hidden=32
    B, T, D, H = 2, 8, 4, 32

    key = jax.random.PRNGKey(0)
    kx, kih, khh, kb = jax.random.split(key, 4)

    x = jax.random.normal(kx, (B, T, D), dtype=jnp.float32)
    # Deterministic synthetic cell parameters (uniform init, like nn.RNNCell)
    scale = 1.0 / jnp.sqrt(jnp.float32(H))
    w_ih = jax.random.uniform(kih, (D, H), jnp.float32, -scale, scale)
    w_hh = jax.random.uniform(khh, (H, H), jnp.float32, -scale, scale)
    b = jax.random.uniform(kb, (H,), jnp.float32, -scale, scale)

    out = rnn_sequence_forward(x, w_ih, w_hh, b)
    out = jax.block_until_ready(out)

    ref = rnn_sequence_reference(x, w_ih, w_hh, b)
    assert out.shape == (B, T, H)
    # bf16 MXU operands with f32 accumulation: compare against the pure-f32
    # reference with a correspondingly looser tolerance.
    assert jnp.allclose(out, ref, atol=5e-2, rtol=5e-2)

    print("KERNEL_OK")
</pallas_src>

<mosaic_0001>
module attributes {stable_mosaic.version = 11 : i64} {
  func.func @_rnn_seq_kernel(%arg0: i32, %arg1: i32, %arg2: memref<8x8x4xf32, #tpu.memory_space<vmem>>, %arg3: memref<4x32xbf16, #tpu.memory_space<vmem>>, %arg4: memref<32x32xbf16, #tpu.memory_space<vmem>>, %arg5: memref<1x32xf32, #tpu.memory_space<vmem>>, %arg6: memref<8x256xf32, #tpu.memory_space<vmem>>, %arg7: memref<8x32xf32, #tpu.memory_space<vmem>>) attributes {dimension_semantics = [#tpu.dimension_semantics<parallel>, #tpu.dimension_semantics<arbitrary>], iteration_bounds = array<i64: 1, 1>, scalar_prefetch = 0 : i64, scratch_operands = 1 : i64, tpu.core_type = #tpu.core_type<tc>, window_params = [{transform_indices = @transform_0, window_bounds = array<i64: 8, 8, 4>}, {pipeline_mode = #tpu.pipeline_mode<synchronous>, transform_indices = @transform_1, window_bounds = array<i64: 4, 32>}, {pipeline_mode = #tpu.pipeline_mode<synchronous>, transform_indices = @transform_2, window_bounds = array<i64: 32, 32>}, {pipeline_mode = #tpu.pipeline_mode<synchronous>, transform_indices = @transform_3, window_bounds = array<i64: 1, 32>}, {transform_indices = @transform_4, window_bounds = array<i64: 8, 256>}]} {
    %c0_i32 = arith.constant 0 : i32
    %0 = arith.cmpi eq, %arg1, %c0_i32 : i32
    %1 = arith.extui %0 : i1 to i32
    %c0_i32_0 = arith.constant 0 : i32
    %2 = arith.cmpi ne, %1, %c0_i32_0 : i32
    scf.if %2 {
      %cst_30 = arith.constant 0.000000e+00 : f32
      %62 = vector.broadcast %cst_30 : f32 to vector<8x32xf32>
      %c0_31 = arith.constant 0 : index
      %c0_32 = arith.constant 0 : index
      %63 = vector.load %arg7[%c0_31, %c0_32] : memref<8x32xf32, #tpu.memory_space<vmem>>, vector<8x32xf32>
      tpu.vector_store %arg7[%c0_31, %c0_32], %62 {strides = array<i32>} : memref<8x32xf32, #tpu.memory_space<vmem>>, vector<8x32xf32>,
    } else {
    }
    %c0 = arith.constant 0 : index
    %c0_1 = arith.constant 0 : index
    %c0_2 = arith.constant 0 : index
    %3 = vector.load %arg2[%c0, %c0_1, %c0_2] : memref<8x8x4xf32, #tpu.memory_space<vmem>>, vector<8x8x4xf32>
    %4 = vector.shape_cast %3 : vector<8x8x4xf32> to vector<64x4xf32>
    %5 = arith.truncf %4 : vector<64x4xf32> to vector<64x4xbf16>
    %c0_3 = arith.constant 0 : index
    %c0_4 = arith.constant 0 : index
    %6 = vector.load %arg3[%c0_3, %c0_4] : memref<4x32xbf16, #tpu.memory_space<vmem>>, vector<4x32xbf16>
    %cst = arith.constant dense<0.000000e+00> : vector<64x32xf32>
    %7 = tpu.matmul %5, %6, %cst {dimension_numbers = #tpu.dot_dimension_numbers<[1], [0], [0], [1], [0, 0, 1, 1], [], []>} : vector<64x4xbf16>, vector<4x32xbf16>, vector<64x32xf32> -> vector<64x32xf32>
    %c0_5 = arith.constant 0 : index
    %c0_6 = arith.constant 0 : index
    %8 = vector.load %arg5[%c0_5, %c0_6] : memref<1x32xf32, #tpu.memory_space<vmem>>, vector<1x32xf32>
    %9 = vector.broadcast %8 : vector<1x32xf32> to vector<64x32xf32>
    %10 = arith.addf %7, %9 : vector<64x32xf32>
    %c0_7 = arith.constant 0 : index
    %c0_8 = arith.constant 0 : index
    %11 = vector.load %arg4[%c0_7, %c0_8] : memref<32x32xbf16, #tpu.memory_space<vmem>>, vector<32x32xbf16>
    %c0_9 = arith.constant 0 : index
    %c0_10 = arith.constant 0 : index
    %12 = vector.load %arg7[%c0_9, %c0_10] : memref<8x32xf32, #tpu.memory_space<vmem>>, vector<8x32xf32>
    %13 = arith.truncf %12 : vector<8x32xf32> to vector<8x32xbf16>
    %cst_11 = arith.constant dense<0.000000e+00> : vector<8x32xf32>
    %14 = tpu.matmul %13, %11, %cst_11 {dimension_numbers = #tpu.dot_dimension_numbers<[1], [0], [0], [1], [0, 0, 1, 1], [], []>} : vector<8x32xbf16>, vector<32x32xbf16>, vector<8x32xf32> -> vector<8x32xf32>
    %15 = vector.extract_strided_slice %10 {offsets = [0, 0], sizes = [8, 32], strides = [1, 1]} : vector<64x32xf32> to vector<8x32xf32>
    %16 = arith.addf %15, %14 : vector<8x32xf32>
    %17 = math.tanh %16 : vector<8x32xf32>
    %c0_12 = arith.constant 0 : index
    %c0_13 = arith.constant 0 : index
    %18 = vector.load %arg6[%c0_12, %c0_13] : memref<8x256xf32, #tpu.memory_space<vmem>>, vector<8x32xf32>
    tpu.vector_store %arg6[%c0_12, %c0_13], %17 {strides = array<i32>} : memref<8x256xf32, #tpu.memory_space<vmem>>, vector<8x32xf32>,
    %19 = arith.truncf %17 : vector<8x32xf32> to vector<8x32xbf16>
    %cst_14 = arith.constant dense<0.000000e+00> : vector<8x32xf32>
    %20 = tpu.matmul %19, %11, %cst_14 {dimension_numbers = #tpu.dot_dimension_numbers<[1], [0], [0], [1], [0, 0, 1, 1], [], []>} : vector<8x32xbf16>, vector<32x32xbf16>, vector<8x32xf32> -> vector<8x32xf32>
    %21 = vector.extract_strided_slice %10 {offsets = [8, 0], sizes = [8, 32], strides = [1, 1]} : vector<64x32xf32> to vector<8x32xf32>
    %22 = arith.addf %21, %20 : vector<8x32xf32>
    %23 = math.tanh %22 : vector<8x32xf32>
    %c0_15 = arith.constant 0 : index
    %c32 = arith.constant 32 : index
    %24 = vector.load %arg6[%c0_15, %c32] : memref<8x256xf32, #tpu.memory_space<vmem>>, vector<8x32xf32>
    tpu.vector_store %arg6[%c0_15, %c32], %23 {strides = array<i32>} : memref<8x256xf32, #tpu.memory_space<vmem>>, vector<8x32xf32>,
    %25 = arith.truncf %23 : vector<8x32xf32> to vector<8x32xbf16>
    %cst_16 = arith.constant dense<0.000000e+00> : vector<8x32xf32>
    %26 = tpu.matmul %25, %11, %cst_16 {dimension_numbers = #tpu.dot_dimension_numbers<[1], [0], [0], [1], [0, 0, 1, 1], [], []>} : vector<8x32xbf16>, vector<32x32xbf16>, vector<8x32xf32> -> vector<8x32xf32>
    %27 = vector.extract_strided_slice %10 {offsets = [16, 0], sizes = [8, 32], strides = [1, 1]} : vector<64x32xf32> to vector<8x32xf32>
    %28 = arith.addf %27, %26 : vector<8x32xf32>
    %29 = math.tanh %28 : vector<8x32xf32>
    %c0_17 = arith.constant 0 : index
    %c64 = arith.constant 64 : index
    %30 = vector.load %arg6[%c0_17, %c64] : memref<8x256xf32, #tpu.memory_space<vmem>>, vector<8x32xf32>
    tpu.vector_store %arg6[%c0_17, %c64], %29 {strides = array<i32>} : memref<8x256xf32, #tpu.memory_space<vmem>>, vector<8x32xf32>,
    %31 = arith.truncf %29 : vector<8x32xf32> to vector<8x32xbf16>
    %cst_18 = arith.constant dense<0.000000e+00> : vector<8x32xf32>
    %32 = tpu.matmul %31, %11, %cst_18 {dimension_numbers = #tpu.dot_dimension_numbers<[1], [0], [0], [1], [0, 0, 1, 1], [], []>} : vector<8x32xbf16>, vector<32x32xbf16>, vector<8x32xf32> -> vector<8x32xf32>
    %33 = vector.extract_strided_slice %10 {offsets = [24, 0], sizes = [8, 32], strides = [1, 1]} : vector<64x32xf32> to vector<8x32xf32>
    %34 = arith.addf %33, %32 : vector<8x32xf32>
    %35 = math.tanh %34 : vector<8x32xf32>
    %c0_19 = arith.constant 0 : index
    %c96 = arith.constant 96 : index
    %36 = vector.load %arg6[%c0_19, %c96] : memref<8x256xf32, #tpu.memory_space<vmem>>, vector<8x32xf32>
    tpu.vector_store %arg6[%c0_19, %c96], %35 {strides = array<i32>} : memref<8x256xf32, #tpu.memory_space<vmem>>, vector<8x32xf32>,
    %37 = arith.truncf %35 : vector<8x32xf32> to vector<8x32xbf16>
    %cst_20 = arith.constant dense<0.000000e+00> : vector<8x32xf32>
    %38 = tpu.matmul %37, %11, %cst_20 {dimension_numbers = #tpu.dot_dimension_numbers<[1], [0], [0], [1], [0, 0, 1, 1], [], []>} : vector<8x32xbf16>, vector<32x32xbf16>, vector<8x32xf32> -> vector<8x32xf32>
    %39 = vector.extract_strided_slice %10 {offsets = [32, 0], sizes = [8, 32], strides = [1, 1]} : vector<64x32xf32> to vector<8x32xf32>
    %40 = arith.addf %39, %38 : vector<8x32xf32>
    %41 = math.tanh %40 : vector<8x32xf32>
    %c0_21 = arith.constant 0 : index
    %c128 = arith.constant 128 : index
    %42 = vector.load %arg6[%c0_21, %c128] : memref<8x256xf32, #tpu.memory_space<vmem>>, vector<8x32xf32>
    tpu.vector_store %arg6[%c0_21, %c128], %41 {strides = array<i32>} : memref<8x256xf32, #tpu.memory_space<vmem>>, vector<8x32xf32>,
    %43 = arith.truncf %41 : vector<8x32xf32> to vector<8x32xbf16>
    %cst_22 = arith.constant dense<0.000000e+00> : vector<8x32xf32>
    %44 = tpu.matmul %43, %11, %cst_22 {dimension_numbers = #tpu.dot_dimension_numbers<[1], [0], [0], [1], [0, 0, 1, 1], [], []>} : vector<8x32xbf16>, vector<32x32xbf16>, vector<8x32xf32> -> vector<8x32xf32>
    %45 = vector.extract_strided_slice %10 {offsets = [40, 0], sizes = [8, 32], strides = [1, 1]} : vector<64x32xf32> to vector<8x32xf32>
    %46 = arith.addf %45, %44 : vector<8x32xf32>
    %47 = math.tanh %46 : vector<8x32xf32>
    %c0_23 = arith.constant 0 : index
    %c160 = arith.constant 160 : index
    %48 = vector.load %arg6[%c0_23, %c160] : memref<8x256xf32, #tpu.memory_space<vmem>>, vector<8x32xf32>
    tpu.vector_store %arg6[%c0_23, %c160], %47 {strides = array<i32>} : memref<8x256xf32, #tpu.memory_space<vmem>>, vector<8x32xf32>,
    %49 = arith.truncf %47 : vector<8x32xf32> to vector<8x32xbf16>
    %cst_24 = arith.constant dense<0.000000e+00> : vector<8x32xf32>
    %50 = tpu.matmul %49, %11, %cst_24 {dimension_numbers = #tpu.dot_dimension_numbers<[1], [0], [0], [1], [0, 0, 1, 1], [], []>} : vector<8x32xbf16>, vector<32x32xbf16>, vector<8x32xf32> -> vector<8x32xf32>
    %51 = vector.extract_strided_slice %10 {offsets = [48, 0], sizes = [8, 32], strides = [1, 1]} : vector<64x32xf32> to vector<8x32xf32>
    %52 = arith.addf %51, %50 : vector<8x32xf32>
    %53 = math.tanh %52 : vector<8x32xf32>
    %c0_25 = arith.constant 0 : index
    %c192 = arith.constant 192 : index
    %54 = vector.load %arg6[%c0_25, %c192] : memref<8x256xf32, #tpu.memory_space<vmem>>, vector<8x32xf32>
    tpu.vector_store %arg6[%c0_25, %c192], %53 {strides = array<i32>} : memref<8x256xf32, #tpu.memory_space<vmem>>, vector<8x32xf32>,
    %55 = arith.truncf %53 : vector<8x32xf32> to vector<8x32xbf16>
    %cst_26 = arith.constant dense<0.000000e+00> : vector<8x32xf32>
    %56 = tpu.matmul %55, %11, %cst_26 {dimension_numbers = #tpu.dot_dimension_numbers<[1], [0], [0], [1], [0, 0, 1, 1], [], []>} : vector<8x32xbf16>, vector<32x32xbf16>, vector<8x32xf32> -> vector<8x32xf32>
    %57 = vector.extract_strided_slice %10 {offsets = [56, 0], sizes = [8, 32], strides = [1, 1]} : vector<64x32xf32> to vector<8x32xf32>
    %58 = arith.addf %57, %56 : vector<8x32xf32>
    %59 = math.tanh %58 : vector<8x32xf32>
    %c0_27 = arith.constant 0 : index
    %c224 = arith.constant 224 : index
    %60 = vector.load %arg6[%c0_27, %c224] : memref<8x256xf32, #tpu.memory_space<vmem>>, vector<8x32xf32>
    tpu.vector_store %arg6[%c0_27, %c224], %59 {strides = array<i32>} : memref<8x256xf32, #tpu.memory_space<vmem>>, vector<8x32xf32>,
    %c0_28 = arith.constant 0 : index
    %c0_29 = arith.constant 0 : index
    %61 = vector.load %arg7[%c0_28, %c0_29] : memref<8x32xf32, #tpu.memory_space<vmem>>, vector<8x32xf32>
    tpu.vector_store %arg7[%c0_28, %c0_29], %59 {strides = array<i32>} : memref<8x32xf32, #tpu.memory_space<vmem>>, vector<8x32xf32>,
    return
  }
  func.func @transform_0(%arg0: i32, %arg1: i32) -> (i32, i32, i32) {
    %c0_i32 = arith.constant 0 : i32
    %c0_i32_0 = arith.constant 0 : i32
    return %arg1, %arg0, %c0_i32 : i32, i32, i32
  }
  func.func @transform_1(%arg0: i32, %arg1: i32) -> (i32, i32) {
    %c0_i32 = arith.constant 0 : i32
    %c0_i32_0 = arith.constant 0 : i32
    %c0_i32_1 = arith.constant 0 : i32
    return %c0_i32, %c0_i32_0 : i32, i32
  }
  func.func @transform_2(%arg0: i32, %arg1: i32) -> (i32, i32) {
    %c0_i32 = arith.constant 0 : i32
    %c0_i32_0 = arith.constant 0 : i32
    %c0_i32_1 = arith.constant 0 : i32
    return %c0_i32, %c0_i32_0 : i32, i32
  }
  func.func @transform_3(%arg0: i32, %arg1: i32) -> (i32, i32) {
    %c0_i32 = arith.constant 0 : i32
    %c0_i32_0 = arith.constant 0 : i32
    %c0_i32_1 = arith.constant 0 : i32
    return %c0_i32, %c0_i32_0 : i32, i32
  }
  func.func @transform_4(%arg0: i32, %arg1: i32) -> (i32, i32) {
    %c0_i32 = arith.constant 0 : i32
    return %arg0, %arg1 : i32, i32
  }
}

</mosaic_0001>

<bundles_post_ra>
// kernel: tpu_custom_call.1
= control target key start
LH: loop header
LB: loop body
LE: loop exit
PB: predicated region body
PF: predicated region fallthrough
CT: control target
= control target key end

     0   :  { %vm58_vm0 = vcmask 1041408   ;;  %v730_v4 = vmov 0.0   ;;  %vm45_vm1 = vcmask 31744   ;;  %vm23_vm2 = vcmask 261120   ;;  %s907_s0 = inlined_call_operand.vmem [shape: f32[8,8,4], index: 0, kind: input, shape index: {}]   ;;  %s908_s1 = inlined_call_operand.vmem [shape: bf16[4,32], index: 1, kind: input, shape index: {}]   ;;  %s909_s2 = inlined_call_operand.vmem [shape: bf16[32,32], index: 2, kind: input, shape index: {}]   ;;  %s910_s3 = inlined_call_operand.vmem [shape: f32[1,32], index: 3, kind: input, shape index: {}]   ;;  %s911_s4 = inlined_call_operand.hbm [shape: f32[8,256], index: 4, kind: output, shape index: {}]  }
   0x1   :  { %v37_v0 = vld [vmem:[%s908_s1] sm:$0x3]  ;;  %v26_v2 = vld [vmem:[%s907_s0 + $0x8] sm:$0xff]  ;;  %617 = vmatprep.subr.bf16.mxu1 %v730_v4  ;;  %v27_v7 = vld [vmem:[%s907_s0 + $0x10] sm:$0xff]  ;;  %vm731_vm3 = vmmov 0   ;;  %24 = vst.msk [vmem:[#allocation2] sm:$0xff] %vm23_vm2, %v730_v4 }
   0x2   :  { %v25_v1 = vld [vmem:[%s907_s0] sm:$0xff]  ;;  %681 = vmatprep.subr.msk.bf16.mxu0 %vm58_vm0, %v37_v0  ;;  %v60_v3 = vsel %vm58_vm0, %v37_v0, 0  ;;  %v28_v8 = vld [vmem:[%s907_s0 + $0x18] sm:$0xff]  ;;  %621 = vmatprep.mubr.msk.bf16.mxu1 %vm731_vm3, %v730_v4  ;;  %v791_v10 = vld [vmem:[%s909_s2 + $0x8] sm:$0xff]  }
   0x3   :  { %v33_v5 = vpack.c.bf16 %v26_v2, %v25_v1  ;;  %608 = vmatpush3.bf16.msra.mxu0 %v60_v3  ;;  %v774_v6 = vld [vmem:[%s909_s2] sm:$0xff]   ;;  %v34_v9 = vpack.c.bf16 %v28_v8, %v27_v7 }
   0x4   :  { %618 = vmatpush3.bf16.msra.mxu1 %v774_v6  ;;  %633 = vmatprep.subr.bf16.mxu0 %v730_v4 }
   0x5   :  { %609 = vmatprep.mubr.msk.bf16.mxu0 %vm45_vm1, %v33_v5 }
   0x6   :  { %9 = vsyncpa [#allocation4], 0  ;;  %610 = vmatmul.mubr.msk.bf16.vlgmr.msra.gmra.mrb[0].mxu0 %vm45_vm1, %v34_v9  ;;  %619 = vmatprep.subr.bf16.mxu1 %v730_v4  ;;  %v812_v15 = vld [vmem:[%s910_s3] ss:$0 sm:$0xff]  ;;  %v30_v27 = vld [vmem:[%s907_s0 + $0x28] sm:$0xff]  ;;  %s732_s10 = smov 32  }
   0x7   :  { %634 = vmatpush3.bf16.msra.mxu0 %v774_v6  ;;  %v29_v26 = vld [vmem:[%s907_s0 + $0x20] sm:$0xff]  ;;  %v31_v29 = vld [vmem:[%s907_s0 + $0x30] sm:$0xff]  ;;  %v32_v30 = vld [vmem:[%s907_s0 + $0x38] sm:$0xff]  ;;  %vm242_vm4 = vcmask 523520   ;;  %s733_s0 = smov 64   ;;  %vm294_vm5 = vcmask 785920  }
   0x8   :  { %635 = vmatprep.subr.bf16.mxu0 %v730_v4  ;;  %620 = vmatpush3.bf16.msra.mxu1 %v791_v10  ;;  %v131_v11 = vld [vmem:[#allocation2] sm:$0xff]  ;;  %v35_v28 = vpack.c.bf16 %v30_v27, %v29_v26  ;;  %v36_v31 = vpack.c.bf16 %v32_v30, %v31_v29  ;;  %s734_s11 = smov 96   ;;  %vm346_vm6 = vcmask 1048320   ;;  %s735_s12 = smov [#allocation3]  }
   0x9   :  { %625 = vmatprep.subr.bf16.mxu1 %v730_v4  ;;  %v132_v12 = vpack.c.bf16 %v131_v11, %v131_v11  ;;  %s555_s13 = sshll.u32 %s735_s12, 4  ;;  %s556_s13 = int_to_ptr.vmem [resolvable:$true] %s555_s13 }
   0xa   :  { %613 = vmatprep.mubr.msk.bf16.mxu0 %vm45_vm1, %v35_v28  ;;  %s706_s14 = scalar_lea.vmem %s556_s13, 256  ;;  %p711_p1 = scmp.lt.s32.totalorder %s556_s13, %s556_s13 }
   0xb   :  { %636 = vmatpush3.bf16.msra.mxu0 %v791_v10  ;;  %622 = vmatmul.mubr.msk.bf16.vlgmr.msra.gmra.mrb[0].mxu1 %vm23_vm2, %v132_v12  ;;  %p707_p0 = scmp.ne.s32.totalorder %s556_s13, %s706_s14  ;;  %p712_p2 = scmp.lt.s32.totalorder %s706_s14, %s706_s14 }
   0xc   :  { %649 = vmatprep.subr.bf16.mxu0 %v730_v4  ;;  %626 = vmatpush3.bf16.msra.mxu1 %v774_v6 }
   0xd   :  { %629 = vmatprep.mubr.msk.bf16.mxu1 %vm731_vm3, %v730_v4  ;;  %627 = vmatprep.subr.bf16.mxu1 %v730_v4  ;;  %p713_p3 = por %p712_p2, %p711_p1 }
   0xe   :  { %614 = vmatmul.mubr.msk.bf16.gmra.mrb[4].mxu0 %vm45_vm1, %v36_v31 }
   0xf   :  { %637 = vmatprep.mubr.msk.bf16.mxu0 %vm731_vm3, %v730_v4  ;;  %p714_p4 = pnand %p713_p3, %p707_p0 }
  0x10   :  { %628 = vmatpush3.bf16.msra.mxu1 %v791_v10 }
  0x11   :  { %641 = vmatprep.subr.bf16.mxu1 %v730_v4 }
  0xd9   :  { %v611_v13 = vpop.f32.mrb[0].mxu0 }
  0xda   :  { %v96_v14 = vpop.f32.mrb[1].mxu0  ;;  %v105_v45 = vadd.f32 %v611_v13, %v812_v15 }
  0xdb   :  { %v814_v16 = vpop.f32.mrb[2].mxu0  ;;  %v97_v18 = vadd.f32 %v812_v15, %v96_v14 }
  0xdc   :  { %v99_v17 = vpop.f32.mrb[3].mxu0  ;;  %v108_v54 = vadd.f32 %v814_v16, %v812_v15 }
  0xdd   :  { %v100_v32 = vadd.f32 %v812_v15, %v99_v17 }
  0xde   :  { %v183_v19 = vpop.f32.mrb[0].mxu1 }
  0xdf   :  { %v189_v20 = vadd.f32 %v183_v19, %v97_v18  ;;  %v623_v21 = vpop.f32.mrb[1].mxu1 }
  0xe0   :  { %v186_v22 = vpop.f32.mrb[2].mxu1 }
  0xe1   :  { %690 = vtanh.f32 %v189_v20  ;;  %v624_v23 = vpop.f32.mrb[3].mxu1  ;;  %v850_v40 = vpop.f32.mrb[4].mxu0 }
  0xe2   :  { %v112_v41 = vpop.f32.mrb[5].mxu0 }
  0xe3   :  { %v852_v42 = vpop.f32.mrb[6].mxu0  ;;  %v113_v62 = vadd.f32 %v812_v15, %v112_v41 }
  0xe4   :  { %v115_v43 = vpop.f32.mrb[7].mxu0  ;;  %v124_v26 = vadd.f32 %v852_v42, %v812_v15 }
  0xe5   :  { %v116_v8 = vadd.f32 %v812_v15, %v115_v43 }
  0xeb   :  { %v691_v24 = vpop.eup %690 }
  0xec   :  { %191 = vst.msk [vmem:[#allocation3] sm:$0xff] %vm23_vm2, %v691_v24  ;;  %v192_v25 = vpack.c.bf16 %v691_v24, %v691_v24 }
  0xee   :  { %630 = vmatmul.mubr.msk.bf16.vlgmr.msra.gmra.mrb[4].mxu1 %vm23_vm2, %v192_v25 }
  0xef   :  { %642 = vmatpush3.bf16.msra.mxu1 %v774_v6  ;;  %645 = vmatprep.mubr.msk.bf16.mxu1 %vm731_vm3, %v730_v4 }
  0xf0   :  { %643 = vmatprep.subr.bf16.mxu1 %v730_v4 }
  0xf3   :  { %644 = vmatpush3.bf16.msra.mxu1 %v791_v10 }
  0xf4   :  { %657 = vmatprep.subr.bf16.mxu1 %v730_v4 }
 0x1c1   :  { %v230_v33 = vpop.f32.mrb[4].mxu1 }
 0x1c2   :  { %v236_v34 = vadd.f32 %v230_v33, %v100_v32  ;;  %v631_v35 = vpop.f32.mrb[5].mxu1 }
 0x1c3   :  { %v233_v36 = vpop.f32.mrb[6].mxu1 }
 0x1c4   :  { %692 = vtanh.f32 %v236_v34  ;;  %v632_v37 = vpop.f32.mrb[7].mxu1 }
 0x1ce   :  { %v693_v38 = vpop.eup %692 }
 0x1cf   :  { %v244_v39 = vpack.c.bf16 %v693_v38, %v693_v38  ;;  %239 = vrot.lane.b32.xlu0 %v693_v38, %s732_s10 }
 0x1d1   :  { %638 = vmatmul.mubr.msk.bf16.vlgmr.msra.gmra.mrb[8].mxu0 %vm23_vm2, %v244_v39 }
 0x1d2   :  { %650 = vmatpush3.bf16.msra.mxu0 %v774_v6  ;;  %653 = vmatprep.mubr.msk.bf16.mxu0 %vm731_vm3, %v730_v4 }
 0x1d3   :  { %651 = vmatprep.subr.bf16.mxu0 %v730_v4 }
 0x1d6   :  { %652 = vmatpush3.bf16.msra.mxu0 %v791_v10 }
 0x1d7   :  { %665 = vmatprep.subr.bf16.mxu0 %v730_v4 }
 0x241   :  { %v240_v44 = vpop.permute.xlu0 %239 }
 0x242   :  { %243 = vst.msk [vmem:[#allocation3] sm:$0xff] %vm242_vm4, %v240_v44 }
 0x2a4   :  { %v282_v46 = vpop.f32.mrb[8].mxu0 }
 0x2a5   :  { %v288_v47 = vadd.f32 %v282_v46, %v105_v45  ;;  %v639_v48 = vpop.f32.mrb[9].mxu0 }
 0x2a6   :  { %v285_v49 = vpop.f32.mrb[10].mxu0 }
 0x2a7   :  { %694 = vtanh.f32 %v288_v47  ;;  %v640_v50 = vpop.f32.mrb[11].mxu0 }
 0x2b1   :  { %v695_v51 = vpop.eup %694 }
 0x2b2   :  { %291 = vrot.lane.b32.xlu1 %v695_v51, %s733_s0  ;;  %v296_v52 = vpack.c.bf16 %v695_v51, %v695_v51 }
 0x2b4   :  { %646 = vmatmul.mubr.msk.bf16.vlgmr.msra.gmra.mrb[8].mxu1 %vm23_vm2, %v296_v52 }
 0x2b5   :  { %658 = vmatpush3.bf16.msra.mxu1 %v774_v6  ;;  %661 = vmatprep.mubr.msk.bf16.mxu1 %vm731_vm3, %v730_v4 }
 0x2b6   :  { %659 = vmatprep.subr.bf16.mxu1 %v730_v4 }
 0x2b9   :  { %660 = vmatpush3.bf16.msra.mxu1 %v791_v10 }
 0x2ba   :  { %673 = vmatprep.subr.bf16.mxu1 %v730_v4 }
 0x324   :  { %v292_v53 = vpop.permute.xlu1 %291 }
 0x325   :  { %295 = vst.msk [vmem:[#allocation3] sm:$0xff] %vm294_vm5, %v292_v53 }
 0x387   :  { %v334_v55 = vpop.f32.mrb[8].mxu1 }
 0x388   :  { %v340_v56 = vadd.f32 %v334_v55, %v108_v54  ;;  %v647_v57 = vpop.f32.mrb[9].mxu1 }
 0x389   :  { %v337_v58 = vpop.f32.mrb[10].mxu1 }
 0x38a   :  { %696 = vtanh.f32 %v340_v56  ;;  %v648_v59 = vpop.f32.mrb[11].mxu1 }
 0x394   :  { %v697_v60 = vpop.eup %696 }
 0x395   :  { %v348_v61 = vpack.c.bf16 %v697_v60, %v697_v60 }
 0x397   :  { %654 = vmatmul.mubr.msk.bf16.vlgmr.msra.gmra.mrb[12].mxu0 %vm23_vm2, %v348_v61 }
 0x398   :  { %666 = vmatpush3.bf16.msra.mxu0 %v774_v6  ;;  %669 = vmatprep.mubr.msk.bf16.mxu0 %vm731_vm3, %v730_v4 }
 0x399   :  { %667 = vmatprep.subr.bf16.mxu0 %v730_v4 }
 0x39c   :  { %668 = vmatpush3.bf16.msra.mxu0 %v791_v10 }
 0x46a   :  { %v386_v63 = vpop.f32.mrb[12].mxu0 }
 0x46b   :  { %v392_v0 = vadd.f32 %v386_v63, %v113_v62  ;;  %v655_v1 = vpop.f32.mrb[13].mxu0 }
 0x46c   :  { %v389_v2 = vpop.f32.mrb[14].mxu0 }
 0x46d   :  { %698 = vtanh.f32 %v392_v0  ;;  %v656_v3 = vpop.f32.mrb[15].mxu0 }
 0x477   :  { %v699_v5 = vpop.eup %698 }
 0x478   :  { %394 = vst.msk [vmem:[#allocation3 + $0x8] sm:$0xff] %vm23_vm2, %v699_v5  ;;  %v395_v7 = vpack.c.bf16 %v699_v5, %v699_v5 }
 0x47a   :  { %662 = vmatmul.mubr.msk.bf16.vlgmr.msra.gmra.mrb[12].mxu1 %vm23_vm2, %v395_v7 }
 0x47b   :  { %674 = vmatpush3.bf16.msra.mxu1 %v774_v6  ;;  %677 = vmatprep.mubr.msk.bf16.mxu1 %vm731_vm3, %v730_v4 }
 0x47c   :  { %675 = vmatprep.subr.bf16.mxu1 %v730_v4 }
 0x47f   :  { %676 = vmatpush3.bf16.msra.mxu1 %v791_v10  ;;  %v121_v10 = vadd.f32 %v850_v40, %v812_v15 }
 0x54d   :  { %v433_v9 = vpop.f32.mrb[12].mxu1 }
 0x54e   :  { %v439_v11 = vadd.f32 %v433_v9, %v116_v8  ;;  %v663_v12 = vpop.f32.mrb[13].mxu1 }
 0x54f   :  { %v436_v13 = vpop.f32.mrb[14].mxu1 }
 0x550   :  { %700 = vtanh.f32 %v439_v11  ;;  %v664_v14 = vpop.f32.mrb[15].mxu1 }
 0x55a   :  { %v701_v16 = vpop.eup %700 }
 0x55b   :  { %442 = vrot.lane.b32.xlu0 %v701_v16, %s732_s10  ;;  %v446_v17 = vpack.c.bf16 %v701_v16, %v701_v16 }
 0x55d   :  { %670 = vmatmul.mubr.msk.bf16.vlgmr.msra.gmra.mrb[16].mxu0 %vm23_vm2, %v446_v17 }
 0x55f   :  { %343 = vrot.lane.b32.xlu0 %v697_v60, %s734_s11 }
 0x5cd   :  { %v443_v6 = vpop.permute.xlu0 %442 }
 0x5ce   :  { %445 = vst.msk [vmem:[#allocation3 + $0x8] sm:$0xff] %vm242_vm4, %v443_v6 }
 0x5d1   :  { %v344_v4 = vpop.permute.xlu0 %343 }
 0x5d2   :  { %347 = vst.msk [vmem:[#allocation3] sm:$0xff] %vm346_vm6, %v344_v4 }
 0x630   :  { %v484_v18 = vpop.f32.mrb[16].mxu0 }
 0x631   :  { %v490_v19 = vadd.f32 %v484_v18, %v121_v10  ;;  %v671_v20 = vpop.f32.mrb[17].mxu0 }
 0x632   :  { %v487_v21 = vpop.f32.mrb[18].mxu0 }
 0x633   :  { %702 = vtanh.f32 %v490_v19  ;;  %v672_v22 = vpop.f32.mrb[19].mxu0 }
 0x63d   :  { %v703_v23 = vpop.eup %702 }
 0x63e   :  { %493 = vrot.lane.b32.xlu1 %v703_v23, %s733_s0  ;;  %v497_v24 = vpack.c.bf16 %v703_v23, %v703_v23 }
 0x640   :  { %678 = vmatmul.mubr.msk.bf16.vlgmr.msra.gmra.mrb[16].mxu1 %vm23_vm2, %v497_v24 }
 0x6b0   :  { %v494_v25 = vpop.permute.xlu1 %493 }
 0x6b1   :  { %496 = vst.msk [vmem:[#allocation3 + $0x8] sm:$0xff] %vm294_vm5, %v494_v25 }
 0x713   :  { %v535_v27 = vpop.f32.mrb[16].mxu1 }
 0x714   :  { %v541_v28 = vadd.f32 %v535_v27, %v124_v26  ;;  %v679_v29 = vpop.f32.mrb[17].mxu1 }
 0x715   :  { %v538_v30 = vpop.f32.mrb[18].mxu1 }
 0x716   :  { %704 = vtanh.f32 %v541_v28  ;;  %v680_v31 = vpop.f32.mrb[19].mxu1 }
 0x720   :  { %v705_v32 = vpop.eup %704 }
 0x721   :  { %548 = vst.msk [vmem:[#allocation2] sm:$0xff] %vm23_vm2, %v705_v32  ;;  %544 = vrot.lane.b32.xlu1 %v705_v32, %s734_s11 }
 0x793   :  { %v545_v33 = vpop.permute.xlu1 %544 }
 0x794   :  { %547 = vst.msk [vmem:[#allocation3 + $0x8] sm:$0xff] %vm346_vm6, %v545_v33 }
 0x795   :  { %717 = shalt.err (!%p714_p4)
}
 0x796   :  { %s718_s17 = scalar_lea.hbm %s911_s4, 256 }
 0x797   :  { %p719_p5 = scmp.ne.s32.totalorder %s911_s4, %s718_s17  ;;  %p722_p6 = scmp.lt.u32.totalorder %s718_s17, %s911_s4 }
 0x799   :  { %p724_p7 = pnand %p722_p6, %p719_p5 }
 0x79b   :  { %727 = shalt.err (!%p724_p7)
}
 0x79c   :  { %558 = dma.vmem_to_hbm [thread:$0]  %s556_s13, 256, %s911_s4, [#allocation4]  }
 0x79d   :  { %728 = dma.done.wait [#allocation4], 256  }
 0x79e   :  { %729 = vsyncadd [#allocation4], 4294967040 }
 0x79f   :  { %562 = vsyncpa [#allocation4], 1 }

</bundles_post_ra>
